<compile_context>
chip_gen: v7x
topology: tpu7x:2x2x1
jax: 0.10.0
libtpu: 0.0.40
codegen_flags: <defaults>
</compile_context>

<pallas_src>
import functools

import jax
import jax.numpy as jnp
from jax.experimental import pallas as pl
from jax.experimental.pallas import tpu as pltpu


# ----------------------------------------------------------------------------
# Generation-aware VMEM budgets
# ----------------------------------------------------------------------------
def _round_up(x, m):
    return ((x + m - 1) // m) * m


def _vmem_capacity_bytes():
    try:
        info = pltpu.get_tpu_info()
        cap = getattr(info, "vmem_capacity_bytes", None)
        if cap:
            return int(cap)
    except Exception:
        pass
    return 64 * 1024 * 1024  # conservative fallback (v7x per-TensorCore VMEM)


_VMEM_PHYS = _vmem_capacity_bytes()
# Scoped VMEM requested from Mosaic: ~96 MiB on 128 MiB parts, ~48 MiB on v7x.
_VMEM_LIMIT_BYTES = min(_VMEM_PHYS * 3 // 4, 100 * 1024 * 1024)
# Budget used for tile derivation (headroom for Mosaic-internal scratch).
_TILE_BUDGET_BYTES = _VMEM_LIMIT_BYTES * 4 // 5


# ----------------------------------------------------------------------------
# Plain-JAX glue helpers (patch sampling / init-time gram)
# ----------------------------------------------------------------------------
def patches_sampling(image, patch_size, stride):
    """image: (1, C, H, W) -> (num_patches, C, P, P), row-major over (i, j)."""
    _, c, h, w = image.shape
    i_starts = jnp.arange(0, h - patch_size + 1, stride)
    j_starts = jnp.arange(0, w - patch_size + 1, stride)
    ni, nj = i_starts.shape[0], j_starts.shape[0]
    row_idx = i_starts[:, None] + jnp.arange(patch_size)[None, :]   # (ni, P)
    col_idx = j_starts[:, None] + jnp.arange(patch_size)[None, :]   # (nj, P)
    g = image[0]                       # (C, H, W)
    g = g[:, row_idx, :]               # (C, ni, P, W)
    g = g[:, :, :, col_idx]            # (C, ni, P, nj, P)
    g = jnp.transpose(g, (1, 3, 0, 2, 4))          # (ni, nj, C, P, P)
    return g.reshape(ni * nj, c, patch_size, patch_size)


def gram_jisuan_ref(image):
    b, c, h, w = image.shape
    f = image.reshape(b, c, h * w)
    return jnp.einsum("bcx,bdx->bcd", f, f) / (h * w * c)


# ----------------------------------------------------------------------------
# Pallas kernels
# ----------------------------------------------------------------------------
def _mrf_match_kernel(style_ref, syn_ref, arg_ref, max_sc, arg_sc, *,
                      tile_ns, ns_real, mask_tail):
    # style_ref: (tile_ns, D) pre-normalized; syn_ref: (D, tile_nq);
    # arg_ref: (1, tile_nq) int32; scratch: running max / argmax per query.
    si = pl.program_id(1)

    @pl.when(si == 0)
    def _init():
        max_sc[...] = jnp.full_like(max_sc, -jnp.inf)
        arg_sc[...] = jnp.zeros_like(arg_sc)

    s = style_ref[...]
    x = syn_ref[...]
    dn = (((1,), (0,)), ((), ()))       # canonical (M,K) x (K,N) on the MXU
    r = jax.lax.dot_general(s, x, dn, preferred_element_type=jnp.float32)

    ids = jax.lax.broadcasted_iota(jnp.int32, r.shape, 0) + si * tile_ns
    if mask_tail:                        # zero-padded style rows never win
        r = jnp.where(ids < ns_real, r, -jnp.inf)

    local_max = jnp.max(r, axis=0, keepdims=True)                  # (1, tile_nq)
    cand = jnp.where(r >= local_max, ids, jnp.int32(2 ** 30))
    local_arg = jnp.min(cand, axis=0, keepdims=True)               # first max in tile

    better = local_max > max_sc[...]     # strict ">" keeps the earliest tile on ties
    max_sc[...] = jnp.where(better, local_max, max_sc[...])
    arg_sc[...] = jnp.where(better, local_arg, arg_sc[...])

    @pl.when(si == pl.num_programs(1) - 1)
    def _finalize():
        arg_ref[...] = arg_sc[...]


def _gram_partial_kernel(syn_ref, o_ref, acc_ref):
    # syn_ref: (C, tile_k); o_ref: (1, C, C) partial gram for this parallel slice.
    @pl.when(pl.program_id(1) == 0)
    def _init():
        acc_ref[...] = jnp.zeros_like(acc_ref)

    sf = syn_ref[...]
    dn = (((1,), (1,)), ((), ()))
    acc_ref[...] += jax.lax.dot_general(sf, sf, dn,
                                        preferred_element_type=jnp.float32)

    @pl.when(pl.program_id(1) == pl.num_programs(1) - 1)
    def _finalize():
        o_ref[...] = acc_ref[...].reshape(o_ref.shape)


def _local_loss_kernel(syn_ref, mat_ref, mse_ref, gram_ref, *,
                       k, chunk, inv_gram, patch_scale, gram_scale):
    # syn_ref/mat_ref: (k*chunk, C, P*P) blocks; outputs: (1,1,1) partial sums.
    @pl.when(pl.program_id(1) == 0)
    def _init():
        mse_ref[...] = jnp.zeros_like(mse_ref)
        gram_ref[...] = jnp.zeros_like(gram_ref)

    def body(i, carry):
        mse_acc, gram_acc = carry
        off = pl.multiple_of(i * chunk, chunk)
        s = syn_ref[pl.ds(off, chunk), :, :]          # (chunk, C, PP)
        t = mat_ref[pl.ds(off, chunk), :, :]
        d = s - t
        sq = d * d
        mse_acc = mse_acc + jnp.sum(
            jnp.sum(jnp.sum(sq, axis=2, keepdims=True), axis=1, keepdims=True),
            axis=0)
        # per-chunk batched grams (matches torch chunking semantics)
        sg = jnp.einsum("bcx,bdx->bcd", s, s, preferred_element_type=jnp.float32)
        tg = jnp.einsum("bcx,bdx->bcd", t, t, preferred_element_type=jnp.float32)
        gd = (tg - sg) * inv_gram
        gsq = gd * gd
        gram_acc = gram_acc + jnp.sum(
            jnp.sum(jnp.sum(gsq, axis=2, keepdims=True), axis=1, keepdims=True),
            axis=0)
        return mse_acc, gram_acc

    zero = jnp.zeros((1, 1), jnp.float32)
    mse_acc, gram_acc = jax.lax.fori_loop(0, k, body, (zero, zero), unroll=True)
    mse_ref[...] += (mse_acc * patch_scale).reshape(1, 1, 1)
    gram_ref[...] += (gram_acc * gram_scale).reshape(1, 1, 1)


# ----------------------------------------------------------------------------
# Kernel wrappers
# ----------------------------------------------------------------------------
def mrf_match(style_unit, syn_flat, *, dtype=jnp.bfloat16,
              tile_ns_cap=None, tile_nq_cap=None):
    """argmax_i <style_unit[i], syn_flat[q]> for every query patch q."""
    ns, d = style_unit.shape
    nq = syn_flat.shape[0]
    item = jnp.dtype(dtype).itemsize
    budget = _TILE_BUDGET_BYTES

    style = style_unit if style_unit.dtype == dtype else style_unit.astype(dtype)
    syn_t = syn_flat.astype(dtype).T          # (D, Nq): canonical RHS orientation

    # ---- style tiling: fully VMEM-resident (single DMA) when it fits ----
    if tile_ns_cap is None and 2 * ns * d * item <= budget // 3:
        tile_ns = ns
    else:
        cap_rows = (budget // 3) // max(1, 2 * d * item)
        cap_rows = min(512, cap_rows)
        if tile_ns_cap is not None:
            cap_rows = min(cap_rows, tile_ns_cap)
        tile_ns = max(8, (cap_rows // 8) * 8)
    if tile_ns >= ns:
        tile_ns, ns_pad = ns, ns
    else:
        ns_pad = _round_up(ns, tile_ns)

    # ---- query tiling: budget syn block + (tile_ns, tile_nq) temporaries ----
    per_col = 2 * d * item + 16 * tile_ns + 16
    avail = max(budget - 2 * tile_ns * d * item, per_col * 128)
    cap_cols = (avail // per_col // 128) * 128
    if tile_nq_cap is not None:
        cap_cols = min(cap_cols, tile_nq_cap)
    cap_cols = max(128, (cap_cols // 128) * 128)
    nq128 = _round_up(nq, 128)
    tile_nq = min(cap_cols, nq128)
    if nq128 >= 256 and tile_nq >= nq128:
        tile_nq = ((nq128 // 128 + 1) // 2) * 128   # >=2 query tiles -> both TCs
    nq_pad = _round_up(nq, tile_nq)

    if ns_pad > ns:
        style = jnp.pad(style, ((0, ns_pad - ns), (0, 0)))
    if nq_pad > nq:
        syn_t = jnp.pad(syn_t, ((0, 0), (0, nq_pad - nq)))

    kernel = functools.partial(_mrf_match_kernel, tile_ns=tile_ns, ns_real=ns,
                               mask_tail=ns_pad > ns)
    arg = pl.pallas_call(
        kernel,
        out_shape=jax.ShapeDtypeStruct((1, nq_pad), jnp.int32),
        grid=(nq_pad // tile_nq, ns_pad // tile_ns),
        in_specs=[pl.BlockSpec((tile_ns, d), lambda qi, si: (si, 0)),
                  pl.BlockSpec((d, tile_nq), lambda qi, si: (0, qi))],
        out_specs=pl.BlockSpec((1, tile_nq), lambda qi, si: (0, qi)),
        scratch_shapes=[pltpu.VMEM((1, tile_nq), jnp.float32),
                        pltpu.VMEM((1, tile_nq), jnp.int32)],
        compiler_params=pltpu.CompilerParams(
            dimension_semantics=("parallel", "arbitrary"),
            vmem_limit_bytes=_VMEM_LIMIT_BYTES),
    )(style, syn_t)
    return arg[0, :nq]


def gram_partial(syn_f, *, dtype=jnp.bfloat16, tile_k_cap=None):
    """Tiled partial Gram of syn_f (C, HW) -> (n_par, C, C) f32 partial sums."""
    c, hw = syn_f.shape
    item = jnp.dtype(dtype).itemsize
    sf = syn_f if syn_f.dtype == dtype else syn_f.astype(dtype)

    cap_k = (_TILE_BUDGET_BYTES // max(1, 4 * c * item) // 128) * 128
    if tile_k_cap is not None:
        cap_k = min(cap_k, tile_k_cap)
    cap_k = max(128, (cap_k // 128) * 128)
    hw128 = _round_up(hw, 128)
    tile_k = min(cap_k, hw128)
    hw_pad = _round_up(hw, tile_k)
    k_tiles = hw_pad // tile_k
    if k_tiles >= 2 and k_tiles % 2:       # even tile count -> clean 2-way split
        hw_pad += tile_k
        k_tiles += 1
    n_par = 2 if k_tiles >= 2 else 1
    tpp = k_tiles // n_par

    if hw_pad > hw:
        sf = jnp.pad(sf, ((0, 0), (0, hw_pad - hw)))   # zero columns: gram unchanged

    return pl.pallas_call(
        _gram_partial_kernel,
        out_shape=jax.ShapeDtypeStruct((n_par, c, c), jnp.float32),
        grid=(n_par, tpp),
        in_specs=[pl.BlockSpec((c, tile_k), lambda p, i: (0, p * tpp + i))],
        out_specs=pl.BlockSpec((1, c, c), lambda p, i: (p, 0, 0)),
        scratch_shapes=[pltpu.VMEM((c, c), jnp.float32)],
        compiler_params=pltpu.CompilerParams(
            dimension_semantics=("parallel", "arbitrary"),
            vmem_limit_bytes=_VMEM_LIMIT_BYTES),
    )(sf)


def local_losses(syn_3d, matched_3d, chunk, *, chunks_per_block=None):
    """Fused patch-MSE (self.loss) + per-chunk gram MSE (self.loss_gram_part)."""
    n, c, pp = syn_3d.shape
    # TODO(synk): the torch original handles a ragged final chunk via min(); here a
    # full final chunk is required (would need masking + per-chunk divisors).
    assert n % chunk == 0, "num patches must be divisible by gpu_chunck_size"
    n_chunks = n // chunk

    bytes_per_chunk = chunk * c * pp * 4
    cap_k = max(1, _TILE_BUDGET_BYTES // (8 * bytes_per_chunk))  # 2 in x 2 bufs x headroom
    if chunks_per_block is not None:
        cap_k = min(cap_k, chunks_per_block)
    k = min(cap_k, n_chunks)
    if n_chunks >= 2:
        k = min(k, n_chunks // 2)          # >=2 blocks -> both TCs on v7x
    k = max(1, k)
    while n_chunks % k:
        k -= 1
    n_blocks = n_chunks // k
    n_par = 2 if (n_blocks >= 2 and n_blocks % 2 == 0) else 1
    bpp = n_blocks // n_par
    rows = k * chunk

    kernel = functools.partial(_local_loss_kernel, k=k, chunk=chunk,
                               inv_gram=1.0 / float(pp * c),
                               patch_scale=1.0 / float(c * pp * n),
                               gram_scale=1.0 / float(chunk * c * c))
    mse_p, gram_p = pl.pallas_call(
        kernel,
        out_shape=(jax.ShapeDtypeStruct((n_par, 1, 1), jnp.float32),
                   jax.ShapeDtypeStruct((n_par, 1, 1), jnp.float32)),
        grid=(n_par, bpp),
        in_specs=[pl.BlockSpec((rows, c, pp), lambda p, i: (p * bpp + i, 0, 0)),
                  pl.BlockSpec((rows, c, pp), lambda p, i: (p * bpp + i, 0, 0))],
        out_specs=(pl.BlockSpec((1, 1, 1), lambda p, i: (p, 0, 0)),
                   pl.BlockSpec((1, 1, 1), lambda p, i: (p, 0, 0))),
        compiler_params=pltpu.CompilerParams(
            dimension_semantics=("parallel", "arbitrary"),
            vmem_limit_bytes=_VMEM_LIMIT_BYTES),
    )(syn_3d, matched_3d)
    return jnp.sum(mse_p), jnp.sum(gram_p)


# ----------------------------------------------------------------------------
# StyleLoss module (JAX / Pallas version)
# ----------------------------------------------------------------------------
class StyleLossPallas:
    layer_loc = (11, 20)
    layer_glob = (3, 8, 15)

    def __init__(self, target, c_mask, s_mask, patch_size, mrf_style_stride,
                 mrf_synthesis_stride, gpu_chunck_size, loc_p=1.0, glo_p=1.0,
                 layer_n=0, jia=False, jia_gram=True,
                 mrf_dtype=jnp.bfloat16,       # bf16 scoring: 3-4x MXU, half HBM
                 gram_dtype=jnp.bfloat16,      # bf16 features, f32 accumulation
                 mrf_tile_ns=None, mrf_tile_nq=None, gram_tile_k=None,
                 chunks_per_block=None):
        self.patch_size = patch_size
        self.mrf_style_stride = mrf_style_stride
        self.mrf_synthesis_stride = mrf_synthesis_stride
        self.gpu_chunck_size = gpu_chunck_size
        self.gram_part = 1
        self.loc_param = loc_p
        self.glo_param = glo_p
        self.layer_n = layer_n
        self.jia = jia
        self.jia_gram = jia_gram
        self.single = True
        self.mrf_dtype = mrf_dtype
        self.gram_dtype = gram_dtype
        self.mrf_tile_ns = mrf_tile_ns
        self.mrf_tile_nq = mrf_tile_nq
        self.gram_tile_k = gram_tile_k
        self.chunks_per_block = chunks_per_block

        self.target = target
        self.s_mask = s_mask
        self.c_mask = c_mask

        # ---- local (MRF) branch constants (hoisted: constant across forward) ----
        if self.jia:
            combine_tar = target + s_mask * self.loc_param
        else:
            combine_tar = jnp.concatenate([target, s_mask * self.loc_param], axis=1)
        self.style_patches = patches_sampling(combine_tar, patch_size, mrf_style_stride)
        ns = self.style_patches.shape[0]
        self.style_patches_flat = self.style_patches.reshape(ns, -1)
        self.style_patches_norm = jnp.sqrt(
            jnp.sum(self.style_patches_flat ** 2, axis=1, keepdims=True))    # (Ns, 1)
        # Pre-normalized (+ pre-cast) style patches: argmax(S.X/||S||) == argmax((S/||S||).X)
        style_unit = self.style_patches_flat / jnp.maximum(self.style_patches_norm, 1e-12)
        self.style_unit_mrf = style_unit.astype(mrf_dtype)

        self.target_gram = gram_jisuan_ref(target)   # kept for parity (unused in fwd)

        self.style_patches_single = patches_sampling(target, patch_size, mrf_style_stride)
        c = self.style_patches_single.shape[1]
        self.style_single_flat = self.style_patches_single.reshape(ns, -1)
        self.style_single_3d = self.style_patches_single.reshape(
            ns, c, patch_size * patch_size)

        # ---- global (Gram) branch constant: precomputed target gram ----
        if self.jia_gram:
            tar_join = target + s_mask * self.glo_param
        else:
            tar_join = jnp.concatenate([target, s_mask * self.glo_param], axis=1)
        _, cj, hj, wj = tar_join.shape
        tf = tar_join.reshape(cj, hj * wj)
        self.tar_join_gram = jnp.dot(
            tf, tf.T, precision=jax.lax.Precision.HIGHEST) / (hj * wj * cj)

    def forward(self, x):
        p = self.patch_size
        # TODO(synk): fold patch extraction into the kernels via strided index_maps
        # (or lax.conv_general_dilated_patches) to drop one HBM round trip.
        syn_single = patches_sampling(x, p, self.mrf_synthesis_stride)  # (Nq, C, P, P)
        nq, c = syn_single.shape[0], syn_single.shape[1]
        syn_single_3d = syn_single.reshape(nq, c, p * p)

        loss = None
        loss_gram = jnp.float32(0.0)
        loss_gram_part = None

        if self.layer_n in self.layer_loc:
            if self.jia:
                combine_syn = x + self.c_mask * self.loc_param
            else:
                combine_syn = jnp.concatenate([x, self.c_mask * self.loc_param], axis=1)
            syn_patches = patches_sampling(combine_syn, p, self.mrf_synthesis_stride)
            syn_flat = syn_patches.reshape(syn_patches.shape[0], -1)

            # MRF matching (chunked conv2d + norm + argmax of the original) on the MXU.
            idx = mrf_match(self.style_unit_mrf, syn_flat, dtype=self.mrf_dtype,
                            tile_ns_cap=self.mrf_tile_ns, tile_nq_cap=self.mrf_tile_nq)

            # TODO(synk): fold this gather into local_losses (scalar-prefetched idx
            # + per-chunk make_async_copy from the HBM style table).
            matched_3d = jnp.take(self.style_single_3d, idx, axis=0)

            # Fused: each patch block is read from HBM once for both losses.
            loss, loss_gram_part = local_losses(
                syn_single_3d, matched_3d, self.gpu_chunck_size,
                chunks_per_block=self.chunks_per_block)

        if self.layer_n in self.layer_glob:
            if self.jia_gram:
                syn_join = x + self.c_mask * self.glo_param
            else:
                syn_join = jnp.concatenate([x, self.c_mask * self.glo_param], axis=1)
            b, cj, hj, wj = syn_join.shape
            assert b == 1
            partial = gram_partial(syn_join.reshape(cj, hj * wj),
                                   dtype=self.gram_dtype, tile_k_cap=self.gram_tile_k)
            syn_gram = jnp.sum(partial, axis=0) * (1.0 / float(hj * wj * cj))
            loss_gram = jnp.mean((self.tar_join_gram - syn_gram) ** 2)

        self.loss = loss
        self.loss_gram = loss_gram
        self.loss_gram_part = loss_gram_part
        # The torch module returns `input` unchanged; losses are stored as state.
        return x, loss, loss_gram, loss_gram_part


# ----------------------------------------------------------------------------
# Pure-JAX reference for verification
# ----------------------------------------------------------------------------
def reference_losses(m, x):
    out = {}
    p = m.patch_size
    syn_single = patches_sampling(x, p, m.mrf_synthesis_stride)
    nq, c = syn_single.shape[0], syn_single.shape[1]
    if m.layer_n in m.layer_loc:
        if m.jia:
            combine_syn = x + m.c_mask * m.loc_param
        else:
            combine_syn = jnp.concatenate([x, m.c_mask * m.loc_param], axis=1)
        syn_flat = patches_sampling(combine_syn, p, m.mrf_synthesis_stride).reshape(nq, -1)
        r = jnp.dot(m.style_patches_flat, syn_flat.T,
                    precision=jax.lax.Precision.HIGHEST) / m.style_patches_norm
        idx = jnp.argmax(r, axis=0)
        a = syn_single.reshape(nq, -1)
        b = m.style_single_flat[idx]
        out["loss"] = jnp.sum(jnp.mean((a - b) ** 2, axis=1)) / nq
        s3 = syn_single.reshape(nq, c, p * p)
        t3 = m.style_single_3d[idx]
        lp = jnp.float32(0.0)
        for i in range(0, nq, m.gpu_chunck_size):
            sa, tb = s3[i:i + m.gpu_chunck_size], t3[i:i + m.gpu_chunck_size]
            sg = jnp.einsum("bcx,bdx->bcd", sa, sa,
                            precision=jax.lax.Precision.HIGHEST) / (p * p * c)
            tg = jnp.einsum("bcx,bdx->bcd", tb, tb,
                            precision=jax.lax.Precision.HIGHEST) / (p * p * c)
            lp = lp + jnp.mean((tg - sg) ** 2)
        out["loss_gram_part"] = lp
    if m.layer_n in m.layer_glob:
        if m.jia_gram:
            syn_join = x + m.c_mask * m.glo_param
            tar_join = m.target + m.s_mask * m.glo_param
        else:
            syn_join = jnp.concatenate([x, m.c_mask * m.glo_param], axis=1)
            tar_join = jnp.concatenate([m.target, m.s_mask * m.glo_param], axis=1)
        _, cj, hj, wj = syn_join.shape
        sf = syn_join.reshape(cj, hj * wj)
        tf = tar_join.reshape(cj, hj * wj)
        sg = jnp.dot(sf, sf.T, precision=jax.lax.Precision.HIGHEST) / (hj * wj * cj)
        tg = jnp.dot(tf, tf.T, precision=jax.lax.Precision.HIGHEST) / (hj * wj * cj)
        out["loss_gram"] = jnp.mean((tg - sg) ** 2)
    return out


# ----------------------------------------------------------------------------
if __name__ == "__main__":
    key = jax.random.PRNGKey(0)
    k1, k2, k3, k4 = jax.random.split(key, 4)

    C, H, W = 8, 32, 32
    P, syn_stride, chunk = 8, 8, 8

    target = jax.random.normal(k1, (1, C, H, W), jnp.float32)
    s_mask = jax.random.normal(k2, (1, C, H, W), jnp.float32)
    c_mask = jax.random.normal(k3, (1, C, H, W), jnp.float32)
    x = jax.random.normal(k4, (1, C, H, W), jnp.float32)

    # --- strict correctness: f32 scoring/gram, small tile caps to exercise the
    #     multi-step reductions, Ns/Nq padding+masking and the 2-way parallel
    #     splits at toy sizes ---
    loc = StyleLossPallas(target, c_mask, s_mask, P, 12, syn_stride, chunk,
                          layer_n=11, mrf_dtype=jnp.float32, mrf_tile_ns=8,
                          chunks_per_block=1)
    out_loc, loss, _, loss_gram_part = loc.forward(x)

    glo = StyleLossPallas(target, c_mask, s_mask, P, 8, syn_stride, chunk,
                          layer_n=3, gram_dtype=jnp.float32, gram_tile_k=384)
    out_glo, _, loss_gram, _ = glo.forward(x)
    jax.block_until_ready((out_loc, loss, loss_gram_part, out_glo, loss_gram))

    ref_loc = reference_losses(loc, x)
    ref_glo = reference_losses(glo, x)
    assert bool(jnp.allclose(loss, ref_loc["loss"], rtol=2e-3, atol=1e-5)), (
        loss, ref_loc["loss"])
    assert bool(jnp.allclose(loss_gram_part, ref_loc["loss_gram_part"],
                             rtol=2e-3, atol=1e-6)), (
        loss_gram_part, ref_loc["loss_gram_part"])
    assert bool(jnp.allclose(loss_gram, ref_glo["loss_gram"], rtol=2e-3, atol=1e-6)), (
        loss_gram, ref_glo["loss_gram"])
    assert bool(jnp.allclose(out_loc, x))

    # --- default fast path: bf16 MRF scoring + bf16 gram features, resident
    #     style matrix, auto tile sizes ---
    loc_fast = StyleLossPallas(target, c_mask, s_mask, P, 8, syn_stride, chunk,
                               layer_n=11)
    _, loss_f, _, loss_gp_f = loc_fast.forward(x)
    glo_fast = StyleLossPallas(target, c_mask, s_mask, P, 8, syn_stride, chunk,
                               layer_n=3)
    _, _, loss_g_f, _ = glo_fast.forward(x)
    jax.block_until_ready((loss_f, loss_gp_f, loss_g_f))

    assert bool(jnp.isfinite(loss_f)) and bool(jnp.isfinite(loss_gp_f))
    assert bool(jnp.isfinite(loss_g_f))
    ref_glo_fast = reference_losses(glo_fast, x)
    assert bool(jnp.allclose(loss_g_f, ref_glo_fast["loss_gram"],
                             rtol=5e-2, atol=1e-5)), (loss_g_f, ref_glo_fast["loss_gram"])

    print("KERNEL_OK")
</pallas_src>

<mosaic_0001>
module attributes {stable_mosaic.version = 11 : i64} {
  func.func @_mrf_match_kernel(%arg0: i32, %arg1: i32, %arg2: memref<8x1024xf32, #tpu.memory_space<vmem>>, %arg3: memref<1024x128xf32, #tpu.memory_space<vmem>>, %arg4: memref<1x128xi32, #tpu.memory_space<vmem>>, %arg5: memref<1x128xf32, #tpu.memory_space<vmem>>, %arg6: memref<1x128xi32, #tpu.memory_space<vmem>>) attributes {dimension_semantics = [#tpu.dimension_semantics<parallel>, #tpu.dimension_semantics<arbitrary>], iteration_bounds = array<i64: 1, 2>, scalar_prefetch = 0 : i64, scratch_operands = 2 : i64, tpu.core_type = #tpu.core_type<tc>, window_params = [{transform_indices = @transform_0, window_bounds = array<i64: 8, 1024>}, {transform_indices = @transform_1, window_bounds = array<i64: 1024, 128>}, {transform_indices = @transform_2, window_bounds = array<i64: 1, 128>}]} {
    %c0_i32 = arith.constant 0 : i32
    %0 = arith.cmpi eq, %arg1, %c0_i32 : i32
    %1 = arith.extui %0 : i1 to i32
    %c0_i32_0 = arith.constant 0 : i32
    %2 = arith.cmpi ne, %1, %c0_i32_0 : i32
    scf.if %2 {
      %cst_18 = arith.constant 0xFF800000 : f32
      %33 = vector.broadcast %cst_18 : f32 to vector<1x128xf32>
      %c0_19 = arith.constant 0 : index
      %c0_20 = arith.constant 0 : index
      %34 = vector.load %arg5[%c0_19, %c0_20] : memref<1x128xf32, #tpu.memory_space<vmem>>, vector<1x128xf32>
      tpu.vector_store %arg5[%c0_19, %c0_20], %33 {strides = array<i32>} : memref<1x128xf32, #tpu.memory_space<vmem>>, vector<1x128xf32>,
      %c0_i32_21 = arith.constant 0 : i32
      %35 = vector.broadcast %c0_i32_21 : i32 to vector<1x128xi32>
      %c0_22 = arith.constant 0 : index
      %c0_23 = arith.constant 0 : index
      %36 = vector.load %arg6[%c0_22, %c0_23] : memref<1x128xi32, #tpu.memory_space<vmem>>, vector<1x128xi32>
      tpu.vector_store %arg6[%c0_22, %c0_23], %35 {strides = array<i32>} : memref<1x128xi32, #tpu.memory_space<vmem>>, vector<1x128xi32>,
    } else {
    }
    %c0 = arith.constant 0 : index
    %c0_1 = arith.constant 0 : index
    %3 = vector.load %arg2[%c0, %c0_1] : memref<8x1024xf32, #tpu.memory_space<vmem>>, vector<8x1024xf32>
    %c0_2 = arith.constant 0 : index
    %c0_3 = arith.constant 0 : index
    %4 = vector.load %arg3[%c0_2, %c0_3] : memref<1024x128xf32, #tpu.memory_space<vmem>>, vector<1024x128xf32>
    %cst = arith.constant dense<0.000000e+00> : vector<8x128xf32>
    %5 = tpu.matmul %3, %4, %cst {dimension_numbers = #tpu.dot_dimension_numbers<[1], [0], [0], [1], [0, 0, 1, 1], [], []>} : vector<8x1024xf32>, vector<1024x128xf32>, vector<8x128xf32> -> vector<8x128xf32>
    %6 = tpu.iota {dimensions = array<i32: 0>} : vector<8x128xi32>
    %c8_i32 = arith.constant 8 : i32
    %7 = arith.muli %arg1, %c8_i32 : i32
    %8 = vector.broadcast %7 : i32 to vector<8x128xi32>
    %9 = arith.addi %6, %8 : vector<8x128xi32>
    %c9_i32 = arith.constant 9 : i32
    %10 = vector.broadcast %c9_i32 : i32 to vector<8x128xi32>
    %11 = arith.cmpi slt, %9, %10 : vector<8x128xi32>
    %cst_4 = arith.constant 0xFF800000 : f32
    %12 = vector.broadcast %cst_4 : f32 to vector<8x128xf32>
    %13 = arith.select %11, %5, %12 : vector<8x128xi1>, vector<8x128xf32>
    %cst_5 = arith.constant dense<0xFF800000> : vector<128xf32>
    %14 = vector.multi_reduction <maximumf>, %13, %cst_5 [0] : vector<8x128xf32> to vector<128xf32>
    %15 = vector.shape_cast %14 : vector<128xf32> to vector<1x128xf32>
    %16 = vector.broadcast %15 : vector<1x128xf32> to vector<8x128xf32>
    %17 = arith.cmpf oge, %13, %16 : vector<8x128xf32>
    %c1073741824_i32 = arith.constant 1073741824 : i32
    %18 = vector.broadcast %c1073741824_i32 : i32 to vector<8x128xi32>
    %19 = arith.select %17, %9, %18 : vector<8x128xi1>, vector<8x128xi32>
    %cst_6 = arith.constant dense<2147483647> : vector<128xi32>
    %20 = vector.multi_reduction <minsi>, %19, %cst_6 [0] : vector<8x128xi32> to vector<128xi32>
    %21 = vector.shape_cast %20 : vector<128xi32> to vector<1x128xi32>
    %c0_7 = arith.constant 0 : index
    %c0_8 = arith.constant 0 : index
    %22 = vector.load %arg5[%c0_7, %c0_8] : memref<1x128xf32, #tpu.memory_space<vmem>>, vector<1x128xf32>
    %23 = arith.cmpf ogt, %15, %22 : vector<1x128xf32>
    %c0_9 = arith.constant 0 : index
    %c0_10 = arith.constant 0 : index
    %24 = vector.load %arg5[%c0_9, %c0_10] : memref<1x128xf32, #tpu.memory_space<vmem>>, vector<1x128xf32>
    %25 = arith.select %23, %15, %24 : vector<1x128xi1>, vector<1x128xf32>
    %c0_11 = arith.constant 0 : index
    %c0_12 = arith.constant 0 : index
    %26 = vector.load %arg5[%c0_11, %c0_12] : memref<1x128xf32, #tpu.memory_space<vmem>>, vector<1x128xf32>
    tpu.vector_store %arg5[%c0_11, %c0_12], %25 {strides = array<i32>} : memref<1x128xf32, #tpu.memory_space<vmem>>, vector<1x128xf32>,
    %c0_13 = arith.constant 0 : index
    %c0_14 = arith.constant 0 : index
    %27 = vector.load %arg6[%c0_13, %c0_14] : memref<1x128xi32, #tpu.memory_space<vmem>>, vector<1x128xi32>
    %28 = arith.select %23, %21, %27 : vector<1x128xi1>, vector<1x128xi32>
    %c0_15 = arith.constant 0 : index
    %c0_16 = arith.constant 0 : index
    %29 = vector.load %arg6[%c0_15, %c0_16] : memref<1x128xi32, #tpu.memory_space<vmem>>, vector<1x128xi32>
    tpu.vector_store %arg6[%c0_15, %c0_16], %28 {strides = array<i32>} : memref<1x128xi32, #tpu.memory_space<vmem>>, vector<1x128xi32>,
    %c1_i32 = arith.constant 1 : i32
    %30 = arith.cmpi eq, %arg1, %c1_i32 : i32
    %31 = arith.extui %30 : i1 to i32
    %c0_i32_17 = arith.constant 0 : i32
    %32 = arith.cmpi ne, %31, %c0_i32_17 : i32
    scf.if %32 {
      %c0_18 = arith.constant 0 : index
      %c0_19 = arith.constant 0 : index
      %33 = vector.load %arg6[%c0_18, %c0_19] : memref<1x128xi32, #tpu.memory_space<vmem>>, vector<1x128xi32>
      %c0_20 = arith.constant 0 : index
      %c0_21 = arith.constant 0 : index
      %34 = vector.load %arg4[%c0_20, %c0_21] : memref<1x128xi32, #tpu.memory_space<vmem>>, vector<1x128xi32>
      tpu.vector_store %arg4[%c0_20, %c0_21], %33 {strides = array<i32>} : memref<1x128xi32, #tpu.memory_space<vmem>>, vector<1x128xi32>,
    } else {
    }
    return
  }
  func.func @transform_0(%arg0: i32, %arg1: i32) -> (i32, i32) {
    %c0_i32 = arith.constant 0 : i32
    %c0_i32_0 = arith.constant 0 : i32
    return %arg1, %c0_i32 : i32, i32
  }
  func.func @transform_1(%arg0: i32, %arg1: i32) -> (i32, i32) {
    %c0_i32 = arith.constant 0 : i32
    %c0_i32_0 = arith.constant 0 : i32
    return %c0_i32, %arg0 : i32, i32
  }
  func.func @transform_2(%arg0: i32, %arg1: i32) -> (i32, i32) {
    %c0_i32 = arith.constant 0 : i32
    %c0_i32_0 = arith.constant 0 : i32
    return %c0_i32, %arg0 : i32, i32
  }
}

</mosaic_0001>

<bundles_post_ra>
// kernel: tpu_custom_call.1
= control target key start
LH: loop header
LB: loop body
LE: loop exit
PB: predicated region body
PF: predicated region fallthrough
CT: control target
= control target key end

     0   :  { %7 = vsyncpa [#allocation5], 0  ;;  %s1450_s0 = inlined_call_operand.hbm [shape: f32[16,1024], index: 0, kind: input, shape index: {}]   ;;  %s1451_s1 = inlined_call_operand.hbm [shape: f32[1024,128], index: 1, kind: input, shape index: {}]   ;;  %s1452_s2 = inlined_call_operand.hbm [shape: s32[1,128], index: 2, kind: output, shape index: {}]  }
   0x1   :  { %9 = vsyncpa [#allocation5 + $0x1], 0 }
   0x2   :  { %10 = vsyncpa [#allocation8], 0 }
   0x3   :  { %11 = vsyncpa [#allocation6], 0  ;;  %s1257_s9 = smov 0   ;;  %s1259_s10 = smov 0  }
   0x4   :  { %s1261_s11 = smov 0   ;;  %s1263_s12 = smov 0  }
   0x5   :  { %s1265_s13 = smov 0   ;;  %s1267_s14 = smov 0  }
   0x6 LB: > { %s728_s15 = sadd.s32 4294967295, %s1233_s14   ;;  %p49_p0 = scmp.ne.s32.totalorder %s1217_s10, %s1213_s9  ;;  %s1233_s14 = sphi %s1267_s14, %s17_s14   ;;  %s1229_s13 = sphi %s1265_s13, %s1470_s13   ;;  %s1225_s12 = sphi %s1263_s12, %s1469_s12   ;;  %s1221_s11 = sphi %s1261_s11, %s1468_s11   ;;  %s1217_s10 = sphi %s1259_s10, %s1467_s10   ;;  %s1213_s9 = sphi %s1257_s9, %s1466_s9  }
   0x7   : > { %p1289_p1 = scmp.eq.s32.totalorder %s728_s15, 0  ;;  %p729_p2 = scmp.ge.s32.totalorder %s1233_s14, 1 }
   0x8   : > { %p112_p3 = scmp.lt.s32.totalorder %s1233_s14, 3  ;;  %s1235_s19 = smov [#allocation7]  }
   0x9   : > { %s1457_s16 = scalar_select %p1289_p1, 1, 0 }
   0xa   : > { %p1297_p4 = por %p1289_p1, %p49_p0  ;;  %p1301_p5 = pnand %p729_p2, %p112_p3 }
   0xb   : > { %s126_s20 = sshll.u32 %s1235_s19, 4  ;;  %s26_s22 = sadd.s32 1, %s1229_s13  ;;  %s127_s20 = int_to_ptr.vmem [resolvable:$true] %s126_s20 }
   0xc   : > { %s1458_s17 = scalar_select %p1297_p4, 1, 0 }
   0xd   : > { %s1459_s18 = scalar_select %p1301_p5, 1, 0 }
   0xe   : > { %p1024_p6 = pneg %p1301_p5  ;;  %s1091_s25 = scalar_lea.hbm %s1451_s1, 16384 }
   0xf   : > { %p1092_p8 = scmp.ne.s32.totalorder %s1451_s1, %s1091_s25  ;;  %p1098_p12 = scmp.lt.u32.totalorder %s1091_s25, %s1451_s1 }
  0x10   : > { %p1309_p7 = pnand %p1024_p6, %p1289_p1 }
  0x12   : > { %p1093_p9 = pneg %p1309_p7 }
  0x14   : > { %p1094_p10 = pnand %p1093_p9, %p1092_p8 }
  0x16   : > { %p1095_p11 = pneg %p1094_p10 }
  0x18   : > { %p1100_p13 = pnand %p1098_p12, %p1095_p11 }
  0x1a   : > { %1103 = shalt.err (!%p1100_p13)
}
  0x1b   : > { %s1104_s30 = scalar_lea.vmem %s127_s20, 16384  ;;  %p1112_p6 = scmp.lt.s32.totalorder %s127_s20, %s127_s20 }
  0x1c   : > { %p1105_p0 = scmp.ne.s32.totalorder %s127_s20, %s1104_s30  ;;  %p1113_p1 = scmp.lt.s32.totalorder %s1104_s30, %s1104_s30 }
  0x1e   : > { %p1107_p2 = pnand %p1105_p0, %p1093_p9  ;;  %p1114_p4 = por %p1113_p1, %p1112_p6 }
  0x20   : > { %p1108_p3 = pneg %p1107_p2 }
  0x22   : > { %p1115_p5 = pnand %p1114_p4, %p1108_p3 }
  0x24   : > { %1118 = shalt.err (!%p1115_p5)
}
  0x25   : > { %s1236_s3 = smov 128   ;;  %s1237_s4 = smov 8  }
  0x26   : > { %1027 = dma.hbm_to_vmem [thread:$0]  (!%p1309_p7), %s1451_s1, 16384, %s127_s20, [#allocation8], %s1236_s3, %s1236_s3, %s1237_s4  }
  0x27   : > { %p27_p1 = scmp.ge.s32.totalorder %s26_s22, 2  ;;  %s36_s7 = sadd.s32 1, %s1221_s11 }
  0x28   : > { %p43_p4 = scmp.ne.s32.totalorder %s1221_s11, %s1217_s10  ;;  %p44_p5 = scmp.eq.s32.totalorder %s1233_s14, 0 }
  0x29   : > { %s1472_s22 = smov (%p27_p1, %s26_s22), 0  ;;  %p1033_p9 = scmp.lt.s32.totalorder %s1233_s14, 2 }
  0x2a   : > { %p45_p8 = por %p44_p5, %p43_p4  ;;  %s33_s8 = ssub.s32 %s1229_s13, %s1472_s22 }
  0x2b   : > { %s140_s9 = sand.u32 1, %s1221_s11   ;;  %p34_p10 = scmp.eq.s32.totalorder %s33_s8, 0 }
  0x2c   : > { %s732_s19 = sshll.u32 %s140_s9, 6  ;;  %s745_s23 = sshll.u32 %s1229_s13, 10 }
  0x2d   : > { %s1342_s24 = scalar_select %p34_p10, %s1221_s11, %s36_s7  }
  0x2e   : > { %s1347_s20 = scalar_lea.hbm %s1450_s0, %s745_s23  ;;  %s144_s26 = scalar_lea.vmem [#allocation4], %s732_s19 }
  0x2f   : > { %s152_s27 = sshll.u32 %s144_s26, 4  ;;  %p1349_p7 = pnand %p1033_p9, %p45_p8  ;;  %s1353_s27 = int_to_ptr.vmem [resolvable:$true] %s152_s27 }
  0x30   : > { %s141_s29 = scalar_lea.sflag [#allocation5], %s140_s9  ;;  %s1119_s30 = scalar_lea.hbm %s1347_s20, 1024 }
  0x31   : > { %p1120_p11 = scmp.ne.s32.totalorder %s1347_s20, %s1119_s30  ;;  %p1121_p12 = pneg %p1349_p7 }
  0x32   : > { %s1124_s5 = scalar_lea.hbm %s1450_s0, 2048  ;;  %p1125_p2 = scmp.lt.u32.totalorder %s1347_s20, %s1450_s0 }
  0x33   : > { %p1122_p13 = pnand %p1121_p12, %p1120_p11  ;;  %p1126_p3 = scmp.lt.u32.totalorder %s1124_s5, %s1119_s30 }
  0x34   : > { %p1128_p1 = scmp.lt.u32.totalorder %s1119_s30, %s1347_s20 }
  0x35   : > { %p1123_p0 = pneg %p1122_p13  ;;  %p1127_p6 = por %p1126_p3, %p1125_p2 }
  0x37   : > { %p1129_p4 = por %p1128_p1, %p1127_p6 }
  0x39   : > { %p1130_p5 = pnand %p1129_p4, %p1123_p0 }
  0x3b   : > { %1133 = shalt.err (!%p1130_p5)
}
  0x3c   : > { %s1134_s8 = scalar_lea.vmem %s1353_s27, 1024  ;;  %s1238_s9 = smov [#allocation4]  }
  0x3d   : > { %p1135_p8 = scmp.ne.s32.totalorder %s1353_s27, %s1134_s8  ;;  %s1139_s19 = sshll.u32 %s1238_s9, 4  ;;  %s1140_s19 = int_to_ptr.vmem [resolvable:$false] %s1139_s19 }
  0x3e   : > { %s1141_s23 = scalar_lea.vmem %s1140_s19, 2048  ;;  %p1142_p11 = scmp.lt.s32.totalorder %s1353_s27, %s1140_s19 }
  0x3f   : > { %p1137_p9 = pnand %p1135_p8, %p1121_p12  ;;  %p1143_p13 = scmp.lt.s32.totalorder %s1141_s23, %s1134_s8 }
  0x41   : > { %p1138_p10 = pneg %p1137_p9  ;;  %p1144_p2 = por %p1143_p13, %p1142_p11 }
  0x43   : > { %p1145_p3 = pnand %p1144_p2, %p1138_p10 }
  0x45   : > { %1148 = shalt.err (!%p1145_p3)
}
  0x46   : > { %1031 = dma.hbm_to_vmem [thread:$0]  (!%p1349_p7), %s1347_s20, 1024, %s1353_s27, %s141_s29  }
  0x47   : > { %p1462_p0 = scmp.ne.s32.totalorder %s1459_s18, 0 }
  0x48   : > { %s163_s21 = sand.u32 (!%p1462_p0), 1, %s1217_s10   ;;  %p1463_p12 = scmp.ne.s32.totalorder (!%p1462_p0), %s1458_s17, 0 }
  0x49   : > { %161 = sbr.rel (%p1462_p0) target bundleno = 442 (0x1ba), region = 28  ;;  %s736_s25 = sshll.u32 (!%p1462_p0), %s163_s21, 6 }
  0x4a   : > { %s164_s26 = scalar_lea.sflag (!%p1462_p0), [#allocation5], %s163_s21  ;;  %s1383_s30 = scalar_lea.vmem (!%p1462_p0), [#allocation4], %s736_s25 }
  0x50   : > { %1200 = dma.done.wait (%p1463_p12), %s164_s26, 1024  }
  0x51   : > { %1202 = vsyncadd (%p1463_p12), %s164_s26, 4294966272  ;;  %p1464_p6 = scmp.ne.s32.totalorder %s1457_s16, 0 }
  0x53   : > { %1204 = dma.done.wait (%p1464_p6), [#allocation8], 16384  }
  0x54   : > { %1206 = vsyncadd (%p1464_p6), [#allocation8], 4294950912  ;;  %p738_p7 = scmp.ne.s32.totalorder %s1225_s12, 0 }
  0x55   : > { %v1239_v0 = vmov (!%p738_p7), -inf   ;;  %v1240_v1 = vmov (!%p738_p7), 0  }
  0x56   : > { %190 = sbr.rel (%p738_p7) target bundleno = 93 (0x5d), region = 40  ;;  %191 = vst [vmem:[#allocation2] sm:$0x1] (!%p738_p7), %v1239_v0  ;;  %192 = vst [vmem:[#allocation3] sm:$0x1] (!%p738_p7), %v1240_v1 }
  0x5d PF: > { %v217_v2 = vld [vmem:[#allocation7 + $0x80] sm:$0xff]  ;;  %v218_v3 = vld [vmem:[#allocation7 + $0x88] sm:$0xff]  ;;  %v219_v13 = vld [vmem:[#allocation7 + $0x90] sm:$0xff]  ;;  %s739_s16 = sshll.u32 %s1225_s12, 3  ;;  %p740_p1 = scmp.ne.s32.totalorder %s1225_s12, 1 }
  0x5e   : > { %v249_v4 = vld [vmem:[#allocation7 + $0x180] sm:$0xff]  ;;  %v886_v5 = vpack.c.bf16 %v218_v3, %v217_v2  ;;  %v250_v6 = vld [vmem:[#allocation7 + $0x188] sm:$0xff]  ;;  %v220_v15 = vld [vmem:[#allocation7 + $0x98] sm:$0xff] }
  0x5f   : > { %v201_v7 = vld [vmem:[#allocation7] sm:$0xff]  ;;  %v202_v8 = vld [vmem:[#allocation7 + $0x8] sm:$0xff]  ;;  %v918_v9 = vpack.c.bf16 %v250_v6, %v249_v4  ;;  %v251_v16 = vld [vmem:[#allocation7 + $0x190] sm:$0xff]  ;;  %v890_v18 = vpack.c.bf16 %v220_v15, %v219_v13 }
  0x60   : > { %v888_v10 = vpack.c.bf16 %v202_v8, %v201_v7  ;;  %v233_v11 = vld [vmem:[#allocation7 + $0x100] sm:$0xff]  ;;  %v234_v12 = vld [vmem:[#allocation7 + $0x108] sm:$0xff]  ;;  %887 = vmatprep.subr.bf16.mxu0 %v886_v5  ;;  %v252_v17 = vld [vmem:[#allocation7 + $0x198] sm:$0xff] }
  0x61   : > { %v920_v14 = vpack.c.bf16 %v234_v12, %v233_v11  ;;  %919 = vmatprep.subr.bf16.mxu1 %v918_v9  ;;  %v922_v19 = vpack.c.bf16 %v252_v17, %v251_v16  ;;  %v203_v20 = vld [vmem:[#allocation7 + $0x10] sm:$0xff]  ;;  %v204_v21 = vld [vmem:[#allocation7 + $0x18] sm:$0xff]  ;;  %v221_v25 = vld [vmem:[#allocation7 + $0xa0] sm:$0xff] }
  0x62   : > { %889 = vmatpush3.bf16.msra.mxu0 %v888_v10  ;;  %v235_v22 = vld [vmem:[#allocation7 + $0x110] sm:$0xff]  ;;  %v892_v23 = vpack.c.bf16 %v204_v21, %v203_v20  ;;  %v236_v24 = vld [vmem:[#allocation7 + $0x118] sm:$0xff]  ;;  %v222_v26 = vld [vmem:[#allocation7 + $0xa8] sm:$0xff] }
  0x63   : > { %921 = vmatpush3.bf16.msra.mxu1 %v920_v14  ;;  %891 = vmatprep.subr.bf16.mxu0 %v890_v18  ;;  %v924_v27 = vpack.c.bf16 %v236_v24, %v235_v22  ;;  %v894_v28 = vpack.c.bf16 %v222_v26, %v221_v25  ;;  %v253_v29 = vld [vmem:[#allocation7 + $0x1a0] sm:$0xff]  ;;  %v254_v30 = vld [vmem:[#allocation7 + $0x1a8] sm:$0xff]  ;;  %v223_v37 = vld [vmem:[#allocation7 + $0xb0] sm:$0xff] }
  0x64   : > { %923 = vmatprep.subr.bf16.mxu1 %v922_v19  ;;  %v205_v31 = vld [vmem:[#allocation7 + $0x20] sm:$0xff]  ;;  %v926_v32 = vpack.c.bf16 %v254_v30, %v253_v29  ;;  %v206_v33 = vld [vmem:[#allocation7 + $0x28] sm:$0xff]  ;;  %v224_v38 = vld [vmem:[#allocation7 + $0xb8] sm:$0xff] }
  0x65   : > { %v237_v34 = vld [vmem:[#allocation7 + $0x120] sm:$0xff]  ;;  %v238_v35 = vld [vmem:[#allocation7 + $0x128] sm:$0xff]  ;;  %v896_v36 = vpack.c.bf16 %v206_v33, %v205_v31  ;;  %v255_v39 = vld [vmem:[#allocation7 + $0x1b0] sm:$0xff]  ;;  %v898_v41 = vpack.c.bf16 %v224_v38, %v223_v37 }
  0x66   : > { %893 = vmatpush3.bf16.msra.mxu0 %v892_v23  ;;  %v928_v40 = vpack.c.bf16 %v238_v35, %v237_v34  ;;  %v256_v42 = vld [vmem:[#allocation7 + $0x1b8] sm:$0xff]  ;;  %v207_v43 = vld [vmem:[#allocation7 + $0x30] sm:$0xff]  ;;  %v225_v48 = vld [vmem:[#allocation7 + $0xc0] sm:$0xff] }
  0x67   : > { %925 = vmatpush3.bf16.msra.mxu1 %v924_v27  ;;  %895 = vmatprep.subr.bf16.mxu0 %v894_v28  ;;  %v208_v44 = vld [vmem:[#allocation7 + $0x38] sm:$0xff]  ;;  %v930_v45 = vpack.c.bf16 %v256_v42, %v255_v39  ;;  %v239_v46 = vld [vmem:[#allocation7 + $0x130] sm:$0xff]  ;;  %v226_v49 = vld [vmem:[#allocation7 + $0xc8] sm:$0xff] }
  0x68   : > { %927 = vmatprep.subr.bf16.mxu1 %v926_v32  ;;  %v240_v47 = vld [vmem:[#allocation7 + $0x138] sm:$0xff]  ;;  %v257_v50 = vld [vmem:[#allocation7 + $0x1c0] sm:$0xff]  ;;  %v258_v51 = vld [vmem:[#allocation7 + $0x1c8] sm:$0xff]  ;;  %v900_v52 = vpack.c.bf16 %v208_v44, %v207_v43  ;;  %v902_v54 = vpack.c.bf16 %v226_v49, %v225_v48 }
  0x69   : > { %v932_v53 = vpack.c.bf16 %v240_v47, %v239_v46  ;;  %v209_v55 = vld [vmem:[#allocation7 + $0x40] sm:$0xff]  ;;  %v210_v56 = vld [vmem:[#allocation7 + $0x48] sm:$0xff]  ;;  %v934_v58 = vpack.c.bf16 %v258_v51, %v257_v50  ;;  %v227_v60 = vld [vmem:[#allocation7 + $0xd0] sm:$0xff] }
  0x6a   : > { %897 = vmatpush3.bf16.msra.mxu0 %v896_v36  ;;  %v241_v57 = vld [vmem:[#allocation7 + $0x140] sm:$0xff]  ;;  %v242_v59 = vld [vmem:[#allocation7 + $0x148] sm:$0xff]  ;;  %v228_v61 = vld [vmem:[#allocation7 + $0xd8] sm:$0xff]  ;;  %v904_v0 = vpack.c.bf16 %v210_v56, %v209_v55 }
  0x6b   : > { %929 = vmatpush3.bf16.msra.mxu1 %v928_v40  ;;  %899 = vmatprep.subr.bf16.mxu0 %v898_v41  ;;  %v259_v62 = vld [vmem:[#allocation7 + $0x1d0] sm:$0xff]  ;;  %v260_v63 = vld [vmem:[#allocation7 + $0x1d8] sm:$0xff]  ;;  %v936_v1 = vpack.c.bf16 %v242_v59, %v241_v57  ;;  %v906_v2 = vpack.c.bf16 %v228_v61, %v227_v60  ;;  %v229_v8 = vld [vmem:[#allocation7 + $0xe0] sm:$0xff] }
  0x6c   : > { %931 = vmatprep.subr.bf16.mxu1 %v930_v45  ;;  %v211_v3 = vld [vmem:[#allocation7 + $0x50] sm:$0xff]  ;;  %v212_v4 = vld [vmem:[#allocation7 + $0x58] sm:$0xff]  ;;  %v938_v6 = vpack.c.bf16 %v260_v63, %v259_v62  ;;  %v230_v9 = vld [vmem:[#allocation7 + $0xe8] sm:$0xff] }
  0x6d   : > { %v243_v5 = vld [vmem:[#allocation7 + $0x150] sm:$0xff]  ;;  %v244_v7 = vld [vmem:[#allocation7 + $0x158] sm:$0xff]  ;;  %v261_v10 = vld [vmem:[#allocation7 + $0x1e0] sm:$0xff]  ;;  %v908_v12 = vpack.c.bf16 %v212_v4, %v211_v3  ;;  %v910_v16 = vpack.c.bf16 %v230_v9, %v229_v8 }
  0x6e   : > { %901 = vmatpush3.bf16.msra.mxu0 %v900_v52  ;;  %v262_v11 = vld [vmem:[#allocation7 + $0x1e8] sm:$0xff]  ;;  %v213_v13 = vld [vmem:[#allocation7 + $0x60] sm:$0xff]  ;;  %v940_v15 = vpack.c.bf16 %v244_v7, %v243_v5  ;;  %v196_v19 = vld [vmem:[%s1383_s30 + $0x18] sm:$0xff] }
  0x6f   : > { %933 = vmatpush3.bf16.msra.mxu1 %v932_v53  ;;  %903 = vmatprep.subr.bf16.mxu0 %v902_v54  ;;  %v214_v14 = vld [vmem:[#allocation7 + $0x68] sm:$0xff]  ;;  %v245_v17 = vld [vmem:[#allocation7 + $0x160] sm:$0xff]  ;;  %v942_v20 = vpack.c.bf16 %v262_v11, %v261_v10  ;;  %v231_v22 = vld [vmem:[#allocation7 + $0xf0] sm:$0xff] }
  0x70   : > { %935 = vmatprep.subr.bf16.mxu1 %v934_v58  ;;  %v194_v18 = vld [vmem:[%s1383_s30 + $0x8] sm:$0xff]  ;;  %v232_v23 = vld [vmem:[#allocation7 + $0xf8] sm:$0xff]  ;;  %v263_v24 = vld [vmem:[#allocation7 + $0x1f0] sm:$0xff]  ;;  %463 = vmatprep.mubr.f32.mxu1 %v196_v19  ;;  %v912_v26 = vpack.c.bf16 %v214_v14, %v213_v13 }
  0x71   : > { %v246_v21 = vld [vmem:[#allocation7 + $0x168] sm:$0xff]  ;;  %393 = vmatprep.mubr.f32.mxu0 %v194_v18  ;;  %v264_v25 = vld [vmem:[#allocation7 + $0x1f8] sm:$0xff]  ;;  %v914_v28 = vpack.c.bf16 %v232_v23, %v231_v22  ;;  %v215_v29 = vld [vmem:[#allocation7 + $0x70] sm:$0xff] }
  0x72   : > { %905 = vmatpush3.bf16.msra.mxu0 %v904_v0  ;;  %v944_v27 = vpack.c.bf16 %v246_v21, %v245_v17  ;;  %v216_v30 = vld [vmem:[#allocation7 + $0x78] sm:$0xff]  ;;  %v247_v31 = vld [vmem:[#allocation7 + $0x170] sm:$0xff]  ;;  %v946_v32 = vpack.c.bf16 %v264_v25, %v263_v24  ;;  %v281_v34 = vld [vmem:[#allocation7 + $0x280] sm:$0xff] }
  0x73   : > { %937 = vmatpush3.bf16.msra.mxu1 %v936_v1  ;;  %907 = vmatprep.subr.bf16.mxu0 %v906_v2  ;;  %v248_v33 = vld [vmem:[#allocation7 + $0x178] sm:$0xff]  ;;  %v282_v35 = vld [vmem:[#allocation7 + $0x288] sm:$0xff]  ;;  %v313_v36 = vld [vmem:[#allocation7 + $0x380] sm:$0xff]  ;;  %v916_v38 = vpack.c.bf16 %v216_v30, %v215_v29 }
  0x74   : > { %939 = vmatprep.subr.bf16.mxu1 %v938_v6  ;;  %v314_v37 = vld [vmem:[#allocation7 + $0x388] sm:$0xff]  ;;  %v948_v39 = vpack.c.bf16 %v248_v33, %v247_v31  ;;  %v950_v40 = vpack.c.bf16 %v282_v35, %v281_v34  ;;  %v265_v41 = vld [vmem:[#allocation7 + $0x200] sm:$0xff]  ;;  %v283_v46 = vld [vmem:[#allocation7 + $0x290] sm:$0xff] }
  0x75   : > { %v266_v42 = vld [vmem:[#allocation7 + $0x208] sm:$0xff]  ;;  %v297_v43 = vld [vmem:[#allocation7 + $0x300] sm:$0xff]  ;;  %v982_v44 = vpack.c.bf16 %v314_v37, %v313_v36  ;;  %v284_v47 = vld [vmem:[#allocation7 + $0x298] sm:$0xff] }
  0x76   : > { %909 = vmatpush3.bf16.msra.mxu0 %v908_v12  ;;  %v298_v45 = vld [vmem:[#allocation7 + $0x308] sm:$0xff]  ;;  %v315_v48 = vld [vmem:[#allocation7 + $0x390] sm:$0xff]  ;;  %v316_v49 = vld [vmem:[#allocation7 + $0x398] sm:$0xff]  ;;  %v952_v52 = vpack.c.bf16 %v266_v42, %v265_v41  ;;  %v954_v54 = vpack.c.bf16 %v284_v47, %v283_v46 }
  0x77   : > { %941 = vmatpush3.bf16.msra.mxu1 %v940_v15  ;;  %911 = vmatprep.subr.bf16.mxu0 %v910_v16  ;;  %v193_v50 = vld [vmem:[%s1383_s30] sm:$0xff]  ;;  %v195_v51 = vld [vmem:[%s1383_s30 + $0x10] sm:$0xff]  ;;  %v984_v53 = vpack.c.bf16 %v298_v45, %v297_v43  ;;  %v268_v56 = vld [vmem:[#allocation7 + $0x218] sm:$0xff]  ;;  %v986_v58 = vpack.c.bf16 %v316_v49, %v315_v48 }
  0x78   : > { %943 = vmatprep.subr.bf16.mxu1 %v942_v20  ;;  %v267_v55 = vld [vmem:[#allocation7 + $0x210] sm:$0xff]  ;;  %v300_v59 = vld [vmem:[#allocation7 + $0x318] sm:$0xff]  ;;  %v285_v60 = vld [vmem:[#allocation7 + $0x2a0] sm:$0xff] }
  0x79   : > { %v299_v57 = vld [vmem:[#allocation7 + $0x310] sm:$0xff]  ;;  %v286_v61 = vld [vmem:[#allocation7 + $0x2a8] sm:$0xff]  ;;  %v317_v62 = vld [vmem:[#allocation7 + $0x3a0] sm:$0xff]  ;;  %v956_v0 = vpack.c.bf16 %v268_v56, %v267_v55 }
  0x7a   : > { %913 = vmatpush3.bf16.msra.mxu0 %v912_v26  ;;  %v318_v63 = vld [vmem:[#allocation7 + $0x3a8] sm:$0xff]  ;;  %v988_v1 = vpack.c.bf16 %v300_v59, %v299_v57  ;;  %v958_v2 = vpack.c.bf16 %v286_v61, %v285_v60  ;;  %v269_v3 = vld [vmem:[#allocation7 + $0x220] sm:$0xff]  ;;  %v287_v8 = vld [vmem:[#allocation7 + $0x2b0] sm:$0xff] }
  0x7b   : > { %945 = vmatpush3.bf16.msra.mxu1 %v944_v27  ;;  %915 = vmatprep.subr.bf16.mxu0 %v914_v28  ;;  %v270_v4 = vld [vmem:[#allocation7 + $0x228] sm:$0xff]  ;;  %v301_v5 = vld [vmem:[#allocation7 + $0x320] sm:$0xff]  ;;  %v990_v6 = vpack.c.bf16 %v318_v63, %v317_v62  ;;  %v288_v9 = vld [vmem:[#allocation7 + $0x2b8] sm:$0xff] }
  0x7c   : > { %947 = vmatprep.subr.bf16.mxu1 %v946_v32  ;;  %v302_v7 = vld [vmem:[#allocation7 + $0x328] sm:$0xff]  ;;  %v319_v10 = vld [vmem:[#allocation7 + $0x3b0] sm:$0xff]  ;;  %v320_v11 = vld [vmem:[#allocation7 + $0x3b8] sm:$0xff]  ;;  %v960_v12 = vpack.c.bf16 %v270_v4, %v269_v3  ;;  %v962_v14 = vpack.c.bf16 %v288_v9, %v287_v8 }
  0x7d   : > { %v992_v13 = vpack.c.bf16 %v302_v7, %v301_v5  ;;  %v271_v15 = vld [vmem:[#allocation7 + $0x230] sm:$0xff]  ;;  %v272_v16 = vld [vmem:[#allocation7 + $0x238] sm:$0xff]  ;;  %v994_v18 = vpack.c.bf16 %v320_v11, %v319_v10  ;;  %v289_v20 = vld [vmem:[#allocation7 + $0x2c0] sm:$0xff] }
  0x7e   : > { %917 = vmatpush3.bf16.msra.mxu0 %v916_v38  ;;  %v303_v17 = vld [vmem:[#allocation7 + $0x330] sm:$0xff]  ;;  %v304_v19 = vld [vmem:[#allocation7 + $0x338] sm:$0xff]  ;;  %v290_v21 = vld [vmem:[#allocation7 + $0x2c8] sm:$0xff]  ;;  %v964_v24 = vpack.c.bf16 %v272_v16, %v271_v15 }
  0x7f   : > { %949 = vmatpush3.bf16.msra.mxu1 %v948_v39  ;;  %951 = vmatprep.subr.bf16.mxu0 %v950_v40  ;;  %v321_v22 = vld [vmem:[#allocation7 + $0x3c0] sm:$0xff]  ;;  %v322_v23 = vld [vmem:[#allocation7 + $0x3c8] sm:$0xff]  ;;  %v200_v26 = vld [vmem:[%s1383_s30 + $0x38] sm:$0xff]  ;;  %v996_v27 = vpack.c.bf16 %v304_v19, %v303_v17  ;;  %v966_v28 = vpack.c.bf16 %v290_v21, %v289_v20  ;;  %v609_v17 = vlaneseq  ;;  %v612_v19 = vstv %s739_s16 }
  0x80   : > { %983 = vmatprep.subr.bf16.mxu1 %v982_v44  ;;  %v198_v25 = vld [vmem:[%s1383_s30 + $0x28] sm:$0xff]  ;;  %v273_v29 = vld [vmem:[#allocation7 + $0x240] sm:$0xff]  ;;  %v998_v32 = vpack.c.bf16 %v322_v23, %v321_v22  ;;  %v291_v34 = vld [vmem:[#allocation7 + $0x2d0] sm:$0xff] }
  0x81   : > { %394 = vmatmul.mubr.f32.vlgmr.msra.gmra.mrb[0].mxu0 %v193_v50  ;;  %v274_v30 = vld [vmem:[#allocation7 + $0x248] sm:$0xff]  ;;  %v305_v31 = vld [vmem:[#allocation7 + $0x340] sm:$0xff]  ;;  %v292_v35 = vld [vmem:[#allocation7 + $0x2d8] sm:$0xff] }
  0x82   : > { %464 = vmatmul.mubr.f32.vlgmr.msra.gmra.mrb[0].mxu1 %v195_v51  ;;  %953 = vmatpush3.bf16.msra.mxu0 %v952_v52  ;;  %v306_v33 = vld [vmem:[#allocation7 + $0x348] sm:$0xff]  ;;  %v323_v36 = vld [vmem:[#allocation7 + $0x3d0] sm:$0xff]  ;;  %v324_v37 = vld [vmem:[#allocation7 + $0x3d8] sm:$0xff]  ;;  %v968_v38 = vpack.c.bf16 %v274_v30, %v273_v29  ;;  %v970_v40 = vpack.c.bf16 %v292_v35, %v291_v34 }
  0x83   : > { %985 = vmatpush3.bf16.msra.mxu1 %v984_v53  ;;  %955 = vmatprep.subr.bf16.mxu0 %v954_v54  ;;  %v1000_v39 = vpack.c.bf16 %v306_v33, %v305_v31  ;;  %v275_v41 = vld [vmem:[#allocation7 + $0x250] sm:$0xff]  ;;  %v276_v42 = vld [vmem:[#allocation7 + $0x258] sm:$0xff]  ;;  %v1002_v44 = vpack.c.bf16 %v324_v37, %v323_v36  ;;  %v293_v46 = vld [vmem:[#allocation7 + $0x2e0] sm:$0xff] }
  0x84   : > { %987 = vmatprep.subr.bf16.mxu1 %v986_v58  ;;  %533 = vmatprep.mubr.f32.mxu0 %v198_v25  ;;  %v307_v43 = vld [vmem:[#allocation7 + $0x350] sm:$0xff]  ;;  %v308_v45 = vld [vmem:[#allocation7 + $0x358] sm:$0xff]  ;;  %v294_v47 = vld [vmem:[#allocation7 + $0x2e8] sm:$0xff]  ;;  %v972_v50 = vpack.c.bf16 %v276_v42, %v275_v41 }
  0x85   : > { %603 = vmatprep.mubr.f32.mxu1 %v200_v26  ;;  %v325_v48 = vld [vmem:[#allocation7 + $0x3e0] sm:$0xff]  ;;  %v326_v49 = vld [vmem:[#allocation7 + $0x3e8] sm:$0xff]  ;;  %v1004_v51 = vpack.c.bf16 %v308_v45, %v307_v43  ;;  %v974_v52 = vpack.c.bf16 %v294_v47, %v293_v46  ;;  %v295_v58 = vld [vmem:[#allocation7 + $0x2f0] sm:$0xff] }
  0x86   : > { %957 = vmatpush3.bf16.msra.mxu0 %v956_v0  ;;  %v277_v53 = vld [vmem:[#allocation7 + $0x260] sm:$0xff]  ;;  %v278_v54 = vld [vmem:[#allocation7 + $0x268] sm:$0xff]  ;;  %v1006_v56 = vpack.c.bf16 %v326_v49, %v325_v48  ;;  %v296_v59 = vld [vmem:[#allocation7 + $0x2f8] sm:$0xff] }
  0x87   : > { %989 = vmatpush3.bf16.msra.mxu1 %v988_v1  ;;  %959 = vmatprep.subr.bf16.mxu0 %v958_v2  ;;  %v309_v55 = vld [vmem:[#allocation7 + $0x360] sm:$0xff]  ;;  %v310_v57 = vld [vmem:[#allocation7 + $0x368] sm:$0xff]  ;;  %v327_v60 = vld [vmem:[#allocation7 + $0x3f0] sm:$0xff]  ;;  %v976_v62 = vpack.c.bf16 %v278_v54, %v277_v53  ;;  %v978_v0 = vpack.c.bf16 %v296_v59, %v295_v58 }
  0x88   : > { %991 = vmatprep.subr.bf16.mxu1 %v990_v6  ;;  %v328_v61 = vld [vmem:[#allocation7 + $0x3f8] sm:$0xff]  ;;  %v1008_v63 = vpack.c.bf16 %v310_v57, %v309_v55  ;;  %v279_v1 = vld [vmem:[#allocation7 + $0x270] sm:$0xff]  ;;  %v197_v8 = vld [vmem:[%s1383_s30 + $0x20] sm:$0xff] }
  0x89   : > { %v280_v2 = vld [vmem:[#allocation7 + $0x278] sm:$0xff]  ;;  %v1010_v3 = vpack.c.bf16 %v328_v61, %v327_v60  ;;  %v311_v4 = vld [vmem:[#allocation7 + $0x370] sm:$0xff] }
  0x8a   : > { %961 = vmatpush3.bf16.msra.mxu0 %v960_v12  ;;  %v312_v5 = vld [vmem:[#allocation7 + $0x378] sm:$0xff]  ;;  %v980_v6 = vpack.c.bf16 %v280_v2, %v279_v1  ;;  %v199_v9 = vld [vmem:[%s1383_s30 + $0x30] sm:$0xff] }
  0x8b   : > { %993 = vmatpush3.bf16.msra.mxu1 %v992_v13  ;;  %963 = vmatprep.subr.bf16.mxu0 %v962_v14  ;;  %v1012_v7 = vpack.c.bf16 %v312_v5, %v311_v4  ;;  %v633_v35 = vld [vmem:[#allocation2] sm:$0x1] }
  0x8c   : > { %995 = vmatprep.subr.bf16.mxu1 %v994_v18  ;;  %v610_v18 = vshrl.u32 %v609_v17, 7 }
  0x8e   : > { %965 = vmatpush3.bf16.msra.mxu0 %v964_v24  ;;  %v613_v23 = vadd.s32 %v612_v19, %v610_v18 }
  0x8f   : > { %997 = vmatpush3.bf16.msra.mxu1 %v996_v27  ;;  %967 = vmatprep.subr.bf16.mxu0 %v966_v28 }
  0x90   : > { %999 = vmatprep.subr.bf16.mxu1 %v998_v32  ;;  %vm614_vm0 = vcmp.lt.s32.totalorder %v613_v23, 9 }
  0x92   : > { %969 = vmatpush3.bf16.msra.mxu0 %v968_v38 }
  0x93   : > { %1001 = vmatpush3.bf16.msra.mxu1 %v1000_v39  ;;  %971 = vmatprep.subr.bf16.mxu0 %v970_v40 }
  0x94   : > { %1003 = vmatprep.subr.bf16.mxu1 %v1002_v44  ;;  %v637_v44 = vld [vmem:[#allocation3] sm:$0x1] }
  0x96   : > { %973 = vmatpush3.bf16.msra.mxu0 %v972_v50 }
  0x97   : > { %1005 = vmatpush3.bf16.msra.mxu1 %v1004_v51  ;;  %975 = vmatprep.subr.bf16.mxu0 %v974_v52 }
  0x98   : > { %1007 = vmatprep.subr.bf16.mxu1 %v1006_v56 }
  0x9a   : > { %977 = vmatpush3.bf16.msra.mxu0 %v976_v62 }
  0x9b   : > { %1009 = vmatpush3.bf16.msra.mxu1 %v1008_v63  ;;  %979 = vmatprep.subr.bf16.mxu0 %v978_v0 }
  0x9c   : > { %1011 = vmatprep.subr.bf16.mxu1 %v1010_v3 }
  0x9e   : > { %981 = vmatpush3.bf16.msra.mxu0 %v980_v6 }
  0x9f   : > { %1013 = vmatpush3.bf16.msra.mxu1 %v1012_v7 }
  0xa1   : > { %534 = vmatmul.mubr.f32.vlgmr.msra.gmra.mrb[2].mxu0 %v197_v8 }
  0xa2   : > { %604 = vmatmul.mubr.f32.vlgmr.msra.gmra.mrb[2].mxu1 %v199_v9 }
 0x154   : > { %v778_v10 = vpop.f32.mrb[0].mxu0 }
 0x155   : > { %v813_v11 = vpop.f32.mrb[0].mxu1  ;;  %v779_v12 = vpop.f32.mrb[1].mxu0 }
 0x156   : > { %v780_v13 = vadd.f32 %v779_v12, %v778_v10  ;;  %v814_v14 = vpop.f32.mrb[1].mxu1 }
 0x157   : > { %v815_v15 = vadd.f32 %v814_v14, %v813_v11 }
 0x159   : > { %v466_v16 = vadd.f32 %v815_v15, %v780_v13 }
 0x174   : > { %v848_v20 = vpop.f32.mrb[2].mxu0 }
 0x175   : > { %v849_v21 = vpop.f32.mrb[3].mxu0  ;;  %v883_v22 = vpop.f32.mrb[2].mxu1 }
 0x176   : > { %v850_v24 = vadd.f32 %v849_v21, %v848_v20  ;;  %v884_v25 = vpop.f32.mrb[3].mxu1 }
 0x177   : > { %v885_v26 = vadd.f32 %v884_v25, %v883_v22 }
 0x178   : > { %v536_v27 = vadd.f32 %v850_v24, %v466_v16 }
 0x17a   : > { %v606_v28 = vadd.f32 %v885_v26, %v536_v27 }
 0x17c   : > { %v615_v29 = vsel %vm614_vm0, %v606_v28, -inf }
 0x17d   : > { %v616_v30 = vrot.slane %v615_v29, 4 }
 0x17f   : > { %v617_v31 = vmax.f32 %v615_v29, %v616_v30 }
 0x181   : > { %v618_v32 = vrot.slane %v617_v31, 2 }
 0x183   : > { %v619_v33 = vmax.f32 %v617_v31, %v618_v32 }
 0x185   : > { %v620_v34 = vrot.slane %v619_v33, 1 }
 0x187   : > { %v621_v36 = vmax.f32 %v619_v33, %v620_v34 }
 0x189   : > { %vm622_vm1 = vcmp.ge.f32.partialorder %v615_v29, %v621_v36  ;;  %vm634_vm2 = vcmp.gt.f32.partialorder %v621_v36, %v633_v35 }
 0x18a   : > { %v623_v37 = vsel %vm622_vm1, %v613_v23, 1073741824  ;;  %v635_v38 = vsel %vm634_vm2, %v621_v36, %v633_v35 }
 0x18b   : > { %v624_v39 = vrot.slane %v623_v37, 4  ;;  %636 = vst [vmem:[#allocation2] sm:$0x1] %v635_v38 }
 0x18d   : > { %vm625_vm3 = vcmp.lt.s32.totalorder %v623_v37, %v624_v39 }
 0x18e   : > { %v626_v40 = vsel %vm625_vm3, %v623_v37, %v624_v39 }
 0x18f   : > { %v627_v41 = vrot.slane %v626_v40, 2 }
 0x191   : > { %vm628_vm4 = vcmp.lt.s32.totalorder %v626_v40, %v627_v41 }
 0x192   : > { %v629_v42 = vsel %vm628_vm4, %v626_v40, %v627_v41  ;;  %643 = sbr.rel (%p740_p1) target bundleno = 417 (0x1a1), region = 44 }
 0x193   : > { %v630_v43 = vrot.slane %v629_v42, 1 }
 0x195   : > { %vm631_vm5 = vcmp.lt.s32.totalorder %v629_v42, %v630_v43 }
 0x196   : > { %v632_v45 = vsel %vm631_vm5, %v629_v42, %v630_v43 }
 0x197   : > { %v638_v46 = vsel %vm634_vm2, %v632_v45, %v637_v44 }
 0x198   : > { %639 = vst [vmem:[#allocation3] sm:$0x1] %v638_v46 }
 0x19f   : > { %v644_v47 = vld [vmem:[#allocation3] sm:$0x1] }
 0x1a0   : > { %645 = vst [vmem:[#allocation9] sm:$0x1] %v644_v47 }
 0x1a1 PF: > { %p1406_p4 = scmp.eq.s32.totalorder %s728_s15, 1  ;;  %s1241_s18 = smov [#allocation9]  }
 0x1a2   : > { %s655_s20 = sshll.u32 %s1241_s18, 4  ;;  %s656_s20 = int_to_ptr.vmem [resolvable:$true] %s655_s20 }
 0x1a3   : > { %s1149_s27 = scalar_lea.vmem %s656_s20, 16  ;;  %s1155_s12 = scalar_lea.vmem %s656_s20, 32 }
 0x1a4   : > { %p1150_p5 = scmp.ne.s32.totalorder %s656_s20, %s1149_s27  ;;  %p1156_p10 = scmp.lt.s32.totalorder %s656_s20, %s656_s20 }
 0x1a5   : > { %p1157_p11 = scmp.lt.s32.totalorder %s1155_s12, %s1149_s27 }
 0x1a6   : > { %p1151_p8 = pnand %p1150_p5, %p1406_p4 }
 0x1a7   : > { %p1158_p13 = por %p1157_p11, %p1156_p10 }
 0x1a8   : > { %p1152_p9 = pneg %p1151_p8 }
 0x1aa   : > { %p1159_p2 = pnand %p1158_p13, %p1152_p9 }
 0x1ac   : > { %1162 = shalt.err (!%p1159_p2)
}
 0x1ad   : > { %s1163_s29 = scalar_lea.hbm %s1452_s2, 16 }
 0x1ae   : > { %p1164_p3 = scmp.ne.s32.totalorder %s1452_s2, %s1163_s29  ;;  %p1169_p6 = scmp.lt.u32.totalorder %s1163_s29, %s1452_s2 }
 0x1b0   : > { %p1165_p0 = pnand %p1164_p3, %p1406_p4 }
 0x1b2   : > { %p1166_p12 = pneg %p1165_p0 }
 0x1b4   : > { %p1171_p7 = pnand %p1169_p6, %p1166_p12 }
 0x1b6   : > { %1174 = shalt.err (!%p1171_p7)
}
 0x1b7   : > { %1021 = dma.vmem_to_hbm [thread:$0]  (%p1406_p4), %s656_s20, 16, %s1452_s2, [#allocation6]  }
 0x1b8   : > { %1208 = dma.done.wait (%p1406_p4), [#allocation6], 16  }
 0x1b9   : > { %1210 = vsyncadd (%p1406_p4), [#allocation6], 4294967280 }
 0x1ba PF: > { %s17_s14 = sadd.s32 1, %s1233_s14   ;;  %s1466_s9 = smov %s1217_s10 }
 0x1bb   : > { %p14_p1 = scmp.ge.s32.totalorder %s17_s14, 4   ;;  %s1467_s10 = smov %s1221_s11 }
 0x1bc   : > { %s1468_s11 = smov %s1342_s24  ;;  %s1469_s12 = smov %s1229_s13 }
 0x1bd   : > { %s1470_s13 = smov %s1472_s22  ;;  %16 = sbr.rel (!%p14_p1) target bundleno = 6 (0x6), region = 79 }
 0x1c4   :  { %668 = vsyncpa [#allocation5], 1 }
 0x1c5   :  { %670 = vsyncpa [#allocation5 + $0x1], 1 }
 0x1c6   :  { %671 = vsyncpa [#allocation8], 1 }
 0x1c7   :  { %672 = vsyncpa [#allocation6], 1 }
 0x1c8   :  { %674 = vsyncpa [#allocation6 + $0x1], 1 }

</bundles_post_ra>
